<compile_context>
chip_gen: v7x
topology: tpu7x:2x2x1
jax: 0.10.0
libtpu: 0.0.40
codegen_flags: <defaults>
</compile_context>

<pallas_src>
import jax
import jax.numpy as jnp
from jax.experimental import pallas as pl
from jax.experimental.pallas import tpu as pltpu


def _make_solu_kernel(compute_dtype):
    def _solu_kernel(x_ref, o_ref):
        x = x_ref[...].astype(compute_dtype)
        o_ref[...] = (x * jnp.exp(x)).astype(o_ref.dtype)
    return _solu_kernel


def _chip_config():
    """(block_bytes, vmem_limit_bytes or None, is_v5) based on the local TPU."""
    try:
        kind = jax.devices()[0].device_kind.lower()
    except Exception:
        kind = ""
    if "v5" in kind:
        return 3 << 20, None, True          # default scoped VMEM 16 MiB on v5e
    if "v6" in kind:
        return 6 << 20, 48 << 20, False
    if "v7" in kind:
        return 8 << 20, 48 << 20, False     # v7x physical VMEM 64 MiB: leave headroom
    return 2 << 20, None, False             # unknown: conservative


def solu(x: jax.Array) -> jax.Array:
    """Computes x * exp(x) with a Pallas TPU kernel (same math as the torch module)."""
    orig_shape = x.shape
    orig_dtype = x.dtype
    n = x.size
    if n == 0:
        return x

    itemsize = jnp.dtype(orig_dtype).itemsize
    block_bytes, vmem_limit, is_v5 = _chip_config()

    # Native bf16 compute on v6e/v7x (they have bf16 VPU/EUP); f32 otherwise.
    if orig_dtype == jnp.bfloat16 and not is_v5:
        compute_dtype = jnp.bfloat16
    else:
        compute_dtype = jnp.float32

    # ---- Layout: flatten to a lane-dense (rows, lanes) slab, avoiding pad ----
    lanes = None
    for cand in (512, 256, 128):
        if n % cand == 0:
            lanes = cand
            break
    flat = x.reshape(-1)
    if lanes is None:
        # Ragged tail: pad up to a multiple of 128 lanes (extra HBM pass, rare case).
        lanes = 128
        rows = pl.cdiv(n, lanes)
        n_pad = rows * lanes
        flat = jnp.pad(flat, (0, n_pad - n))
        padded = True
    else:
        rows = n // lanes
        n_pad = n
        padded = False
    x2 = flat.reshape(rows, lanes)

    # ---- Row tile: block_bytes target, sublane-packing multiple, megacore split ----
    row_mult = max(8, 32 // itemsize)             # 8 (f32), 16 (bf16/f16), 32 (int8)
    target_tr = max(row_mult,
                    (block_bytes // (lanes * itemsize)) // row_mult * row_mult)
    # Cap so the grid has >= ~4 steps when possible (megacore sharding on v7x).
    quarter = ((pl.cdiv(rows, 4) + row_mult - 1) // row_mult) * row_mult
    tr = min(target_tr, quarter)
    if tr >= rows:
        tr = rows                                 # single full-extent block (legal)
    grid = (pl.cdiv(rows, tr),)                   # partial last block masked automatically

    cp_kwargs = dict(dimension_semantics=("parallel",))
    if vmem_limit is not None:
        cp_kwargs["vmem_limit_bytes"] = vmem_limit

    out2 = pl.pallas_call(
        _make_solu_kernel(compute_dtype),
        out_shape=jax.ShapeDtypeStruct((rows, lanes), orig_dtype),
        grid_spec=pltpu.PrefetchScalarGridSpec(
            num_scalar_prefetch=0,
            grid=grid,
            in_specs=[pl.BlockSpec((tr, lanes), lambda i: (i, 0))],
            out_specs=pl.BlockSpec((tr, lanes), lambda i: (i, 0)),
        ),
        compiler_params=pltpu.CompilerParams(**cp_kwargs),
        cost_estimate=pl.CostEstimate(
            flops=n, transcendentals=n, bytes_accessed=2 * n * itemsize),
    )(x2)

    out_flat = out2.reshape(-1)
    if padded:
        out_flat = out_flat[:n]
    return out_flat.reshape(orig_shape)


if __name__ == "__main__":
    key = jax.random.PRNGKey(0)
    # Small NCHW-style input consistent with the module's forward.
    x = jax.random.normal(key, (2, 4, 16, 16), dtype=jnp.float32)

    out = jax.block_until_ready(solu(x))

    # Reference check against plain JAX (same math as torch: x * exp(x)).
    ref = x * jnp.exp(x)
    assert out.shape == x.shape and out.dtype == x.dtype
    assert jnp.allclose(out, ref, atol=1e-6, rtol=1e-6)

    print("KERNEL_OK")
</pallas_src>

<mosaic_0001>
module attributes {stable_mosaic.version = 11 : i64} {
  func.func @_solu_kernel(%arg0: i32, %arg1: memref<4x512xf32, #tpu.memory_space<vmem>>, %arg2: memref<4x512xf32, #tpu.memory_space<vmem>>) attributes {dimension_semantics = [#tpu.dimension_semantics<parallel>], iteration_bounds = array<i64: 1>, scalar_prefetch = 0 : i64, scratch_operands = 0 : i64, tpu.core_type = #tpu.core_type<tc>, window_params = [{transform_indices = @transform_0, window_bounds = array<i64: 4, 512>}, {transform_indices = @transform_1, window_bounds = array<i64: 4, 512>}]} {
    %c0 = arith.constant 0 : index
    %c0_0 = arith.constant 0 : index
    %0 = vector.load %arg1[%c0, %c0_0] : memref<4x512xf32, #tpu.memory_space<vmem>>, vector<4x512xf32>
    %1 = math.exp %0 : vector<4x512xf32>
    %2 = arith.mulf %0, %1 : vector<4x512xf32>
    %c0_1 = arith.constant 0 : index
    %c0_2 = arith.constant 0 : index
    %3 = vector.load %arg2[%c0_1, %c0_2] : memref<4x512xf32, #tpu.memory_space<vmem>>, vector<4x512xf32>
    tpu.vector_store %arg2[%c0_1, %c0_2], %2 {strides = array<i32>} : memref<4x512xf32, #tpu.memory_space<vmem>>, vector<4x512xf32>,
    return
  }
  func.func @transform_0(%arg0: i32) -> (i32, i32) {
    %c0_i32 = arith.constant 0 : i32
    %c0_i32_0 = arith.constant 0 : i32
    return %arg0, %c0_i32 : i32, i32
  }
  func.func @transform_1(%arg0: i32) -> (i32, i32) {
    %c0_i32 = arith.constant 0 : i32
    %c0_i32_0 = arith.constant 0 : i32
    return %arg0, %c0_i32 : i32, i32
  }
}

</mosaic_0001>

<bundles_post_ra>
// kernel: tpu_custom_call.1
= control target key start
LH: loop header
LB: loop body
LE: loop exit
PB: predicated region body
PF: predicated region fallthrough
CT: control target
= control target key end

     0   :  { %6 = vsyncpa [#allocation3], 0  ;;  %s136_s0 = inlined_call_operand.hbm [shape: f32[4,512], index: 0, kind: input, shape index: {}]   ;;  %s137_s1 = inlined_call_operand.hbm [shape: f32[4,512], index: 1, kind: output, shape index: {}]  }
   0x1   :  { %7 = vsyncpa [#allocation4], 0  ;;  %s100_s6 = smov [#allocation2]   ;;  %s52_s10 = scalar_lea.hbm %s136_s0, 256 }
   0x2   :  { %s14_s7 = sshll.u32 %s100_s6, 4  ;;  %p53_p0 = scmp.ne.s32.totalorder %s136_s0, %s52_s10  ;;  %s15_s7 = int_to_ptr.vmem [resolvable:$true] %s14_s7 }
   0x3   :  { %p56_p1 = scmp.lt.u32.totalorder %s52_s10, %s136_s0 }
   0x5   :  { %p58_p2 = pnand %p56_p1, %p53_p0 }
   0x7   :  { %61 = shalt.err (!%p58_p2)
}
   0x8   :  { %s62_s15 = scalar_lea.vmem %s15_s7, 256  ;;  %p67_p4 = scmp.lt.s32.totalorder %s15_s7, %s15_s7 }
   0x9   :  { %p63_p3 = scmp.ne.s32.totalorder %s15_s7, %s62_s15  ;;  %p68_p5 = scmp.lt.s32.totalorder %s62_s15, %s62_s15 }
   0xb   :  { %p69_p6 = por %p68_p5, %p67_p4 }
   0xd   :  { %p70_p7 = pnand %p69_p6, %p63_p3 }
   0xf   :  { %73 = shalt.err (!%p70_p7)
}
  0x10   :  { %17 = dma.hbm_to_vmem [thread:$0]  %s136_s0, 256, %s15_s7, [#allocation3]  }
  0x11   :  { %96 = dma.done.wait [#allocation3], 256  }
  0x12   :  { %97 = vsyncadd [#allocation3], 4294967040  ;;  %v21_v0 = vld [vmem:[#allocation2] sm:$0xff]  ;;  %v22_v1 = vld [vmem:[#allocation2 + $0x8] sm:$0xff]  ;;  %s101_s18 = smov [#allocation5]  }
  0x13   :  { %v23_v2 = vmul.f32 1.442695, %v21_v0  ;;  %v25_v3 = vmul.f32 1.442695, %v22_v1  ;;  %s37_s19 = sshll.u32 %s101_s18, 4  ;;  %s38_s19 = int_to_ptr.vmem [resolvable:$true] %s37_s19 }
  0x14   :  { %s74_s20 = scalar_lea.vmem %s38_s19, 256  ;;  %p79_p9 = scmp.lt.s32.totalorder %s38_s19, %s38_s19 }
  0x15   :  { %48 = vpow2.f32 %v23_v2  ;;  %p75_p8 = scmp.ne.s32.totalorder %s38_s19, %s74_s20  ;;  %p80_p10 = scmp.lt.s32.totalorder %s74_s20, %s74_s20 }
  0x16   :  { %50 = vpow2.f32 %v25_v3 }
  0x17   :  { %p81_p11 = por %p80_p10, %p79_p9 }
  0x19   :  { %p82_p12 = pnand %p81_p11, %p75_p8 }
  0x1f   :  { %v49_v4 = vpop.eup %48 }
  0x20   :  { %v51_v5 = vpop.eup %50  ;;  %v27_v6 = vmul.f32 %v49_v4, %v21_v0 }
  0x21   :  { %v28_v7 = vmul.f32 %v51_v5, %v22_v1 }
  0x22   :  { %29 = vst [vmem:[#allocation5] sm:$0xff] %v27_v6 }
  0x23   :  { %30 = vst [vmem:[#allocation5 + $0x8] sm:$0xff] %v28_v7 }
  0x24   :  { %85 = shalt.err (!%p82_p12)
}
  0x25   :  { %s86_s22 = scalar_lea.hbm %s137_s1, 256 }
  0x26   :  { %p87_p13 = scmp.ne.s32.totalorder %s137_s1, %s86_s22  ;;  %p90_p0 = scmp.lt.u32.totalorder %s86_s22, %s137_s1 }
  0x28   :  { %p92_p1 = pnand %p90_p0, %p87_p13 }
  0x2a   :  { %95 = shalt.err (!%p92_p1)
}
  0x2b   :  { %40 = dma.vmem_to_hbm [thread:$0]  %s38_s19, 256, %s137_s1, [#allocation4]  }
  0x2c   :  { %98 = dma.done.wait [#allocation4], 256  }
  0x2d   :  { %99 = vsyncadd [#allocation4], 4294967040 }
  0x2e   :  { %44 = vsyncpa [#allocation3], 1 }
  0x2f   :  { %45 = vsyncpa [#allocation4], 1 }

</bundles_post_ra>
